<compile_context>
chip_gen: v7x
topology: tpu7x:2x2x1
jax: 0.10.0
libtpu: 0.0.40
codegen_flags: <defaults>
</compile_context>

<pallas_src>
import functools
import math

import jax
import jax.numpy as jnp
import numpy as np
from jax.experimental import pallas as pl
from jax.experimental.pallas import tpu as pltpu


_INV_SQRT2 = 0.7071067811865476


def _round_up(x, m):
    return ((x + m - 1) // m) * m


def _erf_f32(x):
    # TODO(synk): no guaranteed erf lowering in Mosaic; use Abramowitz & Stegun
    # 7.1.26 (abs err < 1.5e-7) built only from exp / mul / add / div / where.
    ax = jnp.abs(x)
    t = 1.0 / (1.0 + 0.3275911 * ax)
    poly = ((((1.061405429 * t - 1.453152027) * t + 1.421413741) * t
             - 0.284496736) * t + 0.254829592) * t
    y = 1.0 - poly * jnp.exp(-ax * ax)
    return jnp.where(x >= 0.0, y, -y)


def _transform_kernel(x_ref, wt_ref, p_ref, o_ref, *, eps, inv_c, mxu_dtype):
    # x_ref : (tm, C)  row-block of flattened hidden_states
    # wt_ref: (C, C)   dense weight, pre-transposed (W^T), VMEM-resident
    # p_ref : (3, C)   packed f32 params: [dense_bias; ln_gamma; ln_beta]
    # o_ref : (tm, C)  output row-block
    x = x_ref[...]
    if mxu_dtype is not None:
        x = x.astype(mxu_dtype)                 # cheap VPU cast; MXU runs bf16

    # dense: x @ W^T  (single full-width MXU matmul, f32 accumulation)
    h = jnp.dot(x, wt_ref[...], preferred_element_type=jnp.float32)

    p = p_ref[...].astype(jnp.float32)          # (3, C)
    h = h + p[0:1, :]                           # dense bias

    # traditional (erf-based) GELU, f32
    h = h * (0.5 * (1.0 + _erf_f32(h * _INV_SQRT2)))

    # BertLayerNorm over last axis: one-pass stats (independent XLU reductions)
    s1 = jnp.sum(h, axis=-1, keepdims=True)
    s2 = jnp.sum(h * h, axis=-1, keepdims=True)
    mean = s1 * inv_c
    var = jnp.maximum(s2 * inv_c - mean * mean, 0.0)
    inv = jax.lax.rsqrt(var + eps)              # EUP rsqrt (free slot)
    y = p[1:2, :] * ((h - mean) * inv) + p[2:3, :]

    o_ref[...] = y.astype(o_ref.dtype)          # one lane-dense full-tile store


def bert_prediction_head_transform(hidden_states, dense_weight, dense_bias,
                                   ln_weight, ln_bias, *, eps=1e-12,
                                   block_rows=512, mxu_dtype=None,
                                   weight_is_transposed=False):
    """Pallas TPU implementation of BertPredictionHeadTransform.forward.

    hidden_states: (..., C); dense_weight: (C, C) PyTorch layout (y = x W^T + b)
    unless weight_is_transposed=True; dense_bias / ln_weight / ln_bias: (C,).
    mxu_dtype: optional dtype (e.g. jnp.bfloat16) for the matmul operands only.
    """
    orig_shape = hidden_states.shape
    C = orig_shape[-1]
    x2d = hidden_states.reshape(-1, C)
    M = x2d.shape[0]

    # Row-block size: multiple of the dtype sublane quantum, <= block_rows.
    itm = jnp.dtype(x2d.dtype).itemsize
    quantum = max(8, 32 // itm)                    # 8 f32, 16 bf16, 32 int8/fp8
    tm = min(_round_up(block_rows, quantum), _round_up(M, quantum))
    grid = (pl.cdiv(M, tm),)                       # partial last block OK

    # Weight: ideally pre-transposed once at parameter-load time.
    w_t = dense_weight if weight_is_transposed else dense_weight.T
    w_t = w_t.astype(mxu_dtype if mxu_dtype is not None else x2d.dtype)

    # Pack dense bias / LN gamma / LN beta into one (3, C) resident f32 array.
    params = jnp.stack([dense_bias.astype(jnp.float32),
                        ln_weight.astype(jnp.float32),
                        ln_bias.astype(jnp.float32)])

    kernel = functools.partial(_transform_kernel, eps=float(eps),
                               inv_c=1.0 / float(C), mxu_dtype=mxu_dtype)

    wtm = jnp.dtype(w_t.dtype).itemsize
    otm = jnp.dtype(hidden_states.dtype).itemsize
    cost = pl.CostEstimate(
        flops=2 * M * C * C + 12 * M * C,
        transcendentals=M * C,                     # exp inside erf
        bytes_accessed=M * C * (itm + otm) + C * C * wtm + 3 * C * 4)

    # Explicit scoped-VMEM budget: double-buffered in/out row blocks, resident
    # W^T (worst case 2 bufs), packed params, f32 body temporaries; 2x margin,
    # capped so the request fits v7x's 64 MiB per-core VMEM.
    est = (4 * tm * C * itm            # 2 x (in + out) row blocks
           + 2 * C * C * wtm           # resident weight
           + 2 * 8 * C * 4             # packed params (sublane-padded)
           + 8 * tm * C * 4)           # f32 elementwise temporaries
    vmem_limit = int(min(max(2 * est, 32 * 2**20), 64 * 2**20))

    def run(single_buffer_resident):
        extra = {}
        if single_buffer_resident and hasattr(pl, "Buffered"):
            # Constant index_map -> the block never changes; one buffer suffices.
            extra = dict(pipeline_mode=pl.Buffered(1))
        return pl.pallas_call(
            kernel,
            out_shape=jax.ShapeDtypeStruct((M, C), hidden_states.dtype),
            grid=grid,
            in_specs=[
                pl.BlockSpec((tm, C), lambda i: (i, 0)),           # x rows
                pl.BlockSpec((C, C), lambda i: (0, 0), **extra),   # W^T resident
                pl.BlockSpec((3, C), lambda i: (0, 0), **extra),   # bias/gamma/beta
            ],
            out_specs=pl.BlockSpec((tm, C), lambda i: (i, 0)),
            compiler_params=pltpu.CompilerParams(
                dimension_semantics=("parallel",),
                vmem_limit_bytes=vmem_limit),
            cost_estimate=cost,
        )(x2d, w_t, params)

    try:
        out = run(True)
    except Exception:
        # This Pallas version rejects pl.Buffered(1) for top-level pipelining;
        # fall back to default double-buffering (correctness identical).
        out = run(False)

    return out.reshape(orig_shape)


def _reference(x, W, b, g, beta, eps=1e-12):
    # pure-JAX mirror of the PyTorch forward (traditional erf GELU)
    h = x @ W.T + b
    h = h * 0.5 * (1.0 + jax.scipy.special.erf(h / math.sqrt(2.0)))
    mean = h.mean(-1, keepdims=True)
    var = ((h - mean) ** 2).mean(-1, keepdims=True)
    nh = (h - mean) / jnp.sqrt(var + eps)
    return g * nh + beta


if __name__ == "__main__":
    # config: batch=2, seq=8, hidden_size=32
    B, S, C = 2, 8, 32

    key = jax.random.PRNGKey(0)
    k_x, k_w, k_b, k_g, k_lb = jax.random.split(key, 5)

    hidden_states = jax.random.normal(k_x, (B, S, C), dtype=jnp.float32)
    dense_weight = (jax.random.normal(k_w, (C, C), dtype=jnp.float32)
                    / math.sqrt(C))
    dense_bias = 0.1 * jax.random.normal(k_b, (C,), dtype=jnp.float32)
    ln_weight = 1.0 + 0.1 * jax.random.normal(k_g, (C,), dtype=jnp.float32)
    ln_bias = 0.1 * jax.random.normal(k_lb, (C,), dtype=jnp.float32)

    out = bert_prediction_head_transform(hidden_states, dense_weight,
                                         dense_bias, ln_weight, ln_bias)
    jax.block_until_ready(out)
    ref = _reference(hidden_states, dense_weight, dense_bias,
                     ln_weight, ln_bias)
    np.testing.assert_allclose(np.asarray(out), np.asarray(ref),
                               rtol=1e-5, atol=2e-5)

    # Exercise the no-pad path: M = 24 rows with a 16-row tile -> a partial
    # last block whose out-of-bounds stores Pallas masks (no wrapper pad/slice).
    hs2 = jax.random.normal(k_x, (3, 8, C), dtype=jnp.float32)
    out2 = bert_prediction_head_transform(hs2, dense_weight, dense_bias,
                                          ln_weight, ln_bias, block_rows=16)
    jax.block_until_ready(out2)
    ref2 = _reference(hs2, dense_weight, dense_bias, ln_weight, ln_bias)
    np.testing.assert_allclose(np.asarray(out2), np.asarray(ref2),
                               rtol=1e-5, atol=2e-5)

    print("KERNEL_OK")
</pallas_src>

<mosaic_0001>
module attributes {stable_mosaic.version = 11 : i64} {
  func.func @_transform_kernel(%arg0: i32, %arg1: memref<16x32xf32, #tpu.memory_space<vmem>>, %arg2: memref<32x32xf32, #tpu.memory_space<vmem>>, %arg3: memref<3x32xf32, #tpu.memory_space<vmem>>, %arg4: memref<16x32xf32, #tpu.memory_space<vmem>>) attributes {dimension_semantics = [#tpu.dimension_semantics<parallel>], iteration_bounds = array<i64: 1>, scalar_prefetch = 0 : i64, scratch_operands = 0 : i64, tpu.core_type = #tpu.core_type<tc>, window_params = [{transform_indices = @transform_0, window_bounds = array<i64: 16, 32>}, {pipeline_mode = #tpu.pipeline_mode<synchronous>, transform_indices = @transform_1, window_bounds = array<i64: 32, 32>}, {pipeline_mode = #tpu.pipeline_mode<synchronous>, transform_indices = @transform_2, window_bounds = array<i64: 3, 32>}, {transform_indices = @transform_3, window_bounds = array<i64: 16, 32>}]} {
    %c0 = arith.constant 0 : index
    %c0_0 = arith.constant 0 : index
    %0 = vector.load %arg1[%c0, %c0_0] : memref<16x32xf32, #tpu.memory_space<vmem>>, vector<16x32xf32>
    %c0_1 = arith.constant 0 : index
    %c0_2 = arith.constant 0 : index
    %1 = vector.load %arg2[%c0_1, %c0_2] : memref<32x32xf32, #tpu.memory_space<vmem>>, vector<32x32xf32>
    %cst = arith.constant dense<0.000000e+00> : vector<16x32xf32>
    %2 = tpu.matmul %0, %1, %cst {dimension_numbers = #tpu.dot_dimension_numbers<[1], [0], [0], [1], [0, 0, 1, 1], [], []>} : vector<16x32xf32>, vector<32x32xf32>, vector<16x32xf32> -> vector<16x32xf32>
    %c0_3 = arith.constant 0 : index
    %c0_4 = arith.constant 0 : index
    %3 = vector.load %arg3[%c0_3, %c0_4] : memref<3x32xf32, #tpu.memory_space<vmem>>, vector<3x32xf32>
    %4 = vector.extract_strided_slice %3 {offsets = [0, 0], sizes = [1, 32], strides = [1, 1]} : vector<3x32xf32> to vector<1x32xf32>
    %5 = vector.broadcast %4 : vector<1x32xf32> to vector<16x32xf32>
    %6 = arith.addf %2, %5 : vector<16x32xf32>
    %cst_5 = arith.constant 0.707106769 : f32
    %7 = vector.broadcast %cst_5 : f32 to vector<16x32xf32>
    %8 = arith.mulf %6, %7 : vector<16x32xf32>
    %9 = math.absf %8 : vector<16x32xf32>
    %cst_6 = arith.constant 0.327591091 : f32
    %10 = vector.broadcast %cst_6 : f32 to vector<16x32xf32>
    %11 = arith.mulf %10, %9 : vector<16x32xf32>
    %cst_7 = arith.constant 1.000000e+00 : f32
    %12 = vector.broadcast %cst_7 : f32 to vector<16x32xf32>
    %13 = arith.addf %12, %11 : vector<16x32xf32>
    %cst_8 = arith.constant 1.000000e+00 : f32
    %14 = vector.broadcast %cst_8 : f32 to vector<16x32xf32>
    %15 = arith.divf %14, %13 : vector<16x32xf32>
    %cst_9 = arith.constant 1.06140542 : f32
    %16 = vector.broadcast %cst_9 : f32 to vector<16x32xf32>
    %17 = arith.mulf %16, %15 : vector<16x32xf32>
    %cst_10 = arith.constant 1.45315206 : f32
    %18 = vector.broadcast %cst_10 : f32 to vector<16x32xf32>
    %19 = arith.subf %17, %18 : vector<16x32xf32>
    %20 = arith.mulf %19, %15 : vector<16x32xf32>
    %cst_11 = arith.constant 1.42141378 : f32
    %21 = vector.broadcast %cst_11 : f32 to vector<16x32xf32>
    %22 = arith.addf %20, %21 : vector<16x32xf32>
    %23 = arith.mulf %22, %15 : vector<16x32xf32>
    %cst_12 = arith.constant 0.284496725 : f32
    %24 = vector.broadcast %cst_12 : f32 to vector<16x32xf32>
    %25 = arith.subf %23, %24 : vector<16x32xf32>
    %26 = arith.mulf %25, %15 : vector<16x32xf32>
    %cst_13 = arith.constant 0.254829586 : f32
    %27 = vector.broadcast %cst_13 : f32 to vector<16x32xf32>
    %28 = arith.addf %26, %27 : vector<16x32xf32>
    %29 = arith.mulf %28, %15 : vector<16x32xf32>
    %cst_14 = arith.constant 0.000000e+00 : f32
    %30 = vector.broadcast %cst_14 : f32 to vector<16x32xf32>
    %31 = arith.subf %30, %9 : vector<16x32xf32>
    %32 = arith.mulf %31, %9 : vector<16x32xf32>
    %33 = math.exp %32 : vector<16x32xf32>
    %34 = arith.mulf %29, %33 : vector<16x32xf32>
    %cst_15 = arith.constant 1.000000e+00 : f32
    %35 = vector.broadcast %cst_15 : f32 to vector<16x32xf32>
    %36 = arith.subf %35, %34 : vector<16x32xf32>
    %cst_16 = arith.constant 0.000000e+00 : f32
    %37 = vector.broadcast %cst_16 : f32 to vector<16x32xf32>
    %38 = arith.cmpf oge, %8, %37 : vector<16x32xf32>
    %cst_17 = arith.constant 0.000000e+00 : f32
    %39 = vector.broadcast %cst_17 : f32 to vector<16x32xf32>
    %40 = arith.subf %39, %36 : vector<16x32xf32>
    %41 = arith.select %38, %36, %40 : vector<16x32xi1>, vector<16x32xf32>
    %cst_18 = arith.constant 1.000000e+00 : f32
    %42 = vector.broadcast %cst_18 : f32 to vector<16x32xf32>
    %43 = arith.addf %42, %41 : vector<16x32xf32>
    %cst_19 = arith.constant 5.000000e-01 : f32
    %44 = vector.broadcast %cst_19 : f32 to vector<16x32xf32>
    %45 = arith.mulf %44, %43 : vector<16x32xf32>
    %46 = arith.mulf %6, %45 : vector<16x32xf32>
    %cst_20 = arith.constant dense<0.000000e+00> : vector<16xf32>
    %47 = vector.multi_reduction <add>, %46, %cst_20 [1] : vector<16x32xf32> to vector<16xf32>
    %48 = vector.shape_cast %47 : vector<16xf32> to vector<16x1xf32>
    %49 = arith.mulf %46, %46 : vector<16x32xf32>
    %cst_21 = arith.constant dense<0.000000e+00> : vector<16xf32>
    %50 = vector.multi_reduction <add>, %49, %cst_21 [1] : vector<16x32xf32> to vector<16xf32>
    %51 = vector.shape_cast %50 : vector<16xf32> to vector<16x1xf32>
    %cst_22 = arith.constant 3.125000e-02 : f32
    %52 = vector.broadcast %cst_22 : f32 to vector<16x1xf32>
    %53 = arith.mulf %48, %52 : vector<16x1xf32>
    %cst_23 = arith.constant 3.125000e-02 : f32
    %54 = vector.broadcast %cst_23 : f32 to vector<16x1xf32>
    %55 = arith.mulf %51, %54 : vector<16x1xf32>
    %56 = arith.mulf %53, %53 : vector<16x1xf32>
    %57 = arith.subf %55, %56 : vector<16x1xf32>
    %cst_24 = arith.constant 0.000000e+00 : f32
    %58 = vector.broadcast %cst_24 : f32 to vector<16x1xf32>
    %59 = arith.maximumf %57, %58 : vector<16x1xf32>
    %cst_25 = arith.constant 9.99999996E-13 : f32
    %60 = vector.broadcast %cst_25 : f32 to vector<16x1xf32>
    %61 = arith.addf %59, %60 : vector<16x1xf32>
    %62 = math.rsqrt %61 : vector<16x1xf32>
    %63 = vector.extract_strided_slice %3 {offsets = [1, 0], sizes = [1, 32], strides = [1, 1]} : vector<3x32xf32> to vector<1x32xf32>
    %64 = vector.broadcast %53 : vector<16x1xf32> to vector<16x32xf32>
    %65 = arith.subf %46, %64 : vector<16x32xf32>
    %66 = vector.broadcast %62 : vector<16x1xf32> to vector<16x32xf32>
    %67 = arith.mulf %65, %66 : vector<16x32xf32>
    %68 = vector.broadcast %63 : vector<1x32xf32> to vector<16x32xf32>
    %69 = arith.mulf %68, %67 : vector<16x32xf32>
    %70 = vector.extract_strided_slice %3 {offsets = [2, 0], sizes = [1, 32], strides = [1, 1]} : vector<3x32xf32> to vector<1x32xf32>
    %71 = vector.broadcast %70 : vector<1x32xf32> to vector<16x32xf32>
    %72 = arith.addf %69, %71 : vector<16x32xf32>
    %c0_26 = arith.constant 0 : index
    %c0_27 = arith.constant 0 : index
    %73 = vector.load %arg4[%c0_26, %c0_27] : memref<16x32xf32, #tpu.memory_space<vmem>>, vector<16x32xf32>
    tpu.vector_store %arg4[%c0_26, %c0_27], %72 {strides = array<i32>} : memref<16x32xf32, #tpu.memory_space<vmem>>, vector<16x32xf32>,
    return
  }
  func.func @transform_0(%arg0: i32) -> (i32, i32) {
    %c0_i32 = arith.constant 0 : i32
    %c0_i32_0 = arith.constant 0 : i32
    return %arg0, %c0_i32 : i32, i32
  }
  func.func @transform_1(%arg0: i32) -> (i32, i32) {
    %c0_i32 = arith.constant 0 : i32
    %c0_i32_0 = arith.constant 0 : i32
    %c0_i32_1 = arith.constant 0 : i32
    return %c0_i32, %c0_i32_0 : i32, i32
  }
  func.func @transform_2(%arg0: i32) -> (i32, i32) {
    %c0_i32 = arith.constant 0 : i32
    %c0_i32_0 = arith.constant 0 : i32
    %c0_i32_1 = arith.constant 0 : i32
    return %c0_i32, %c0_i32_0 : i32, i32
  }
  func.func @transform_3(%arg0: i32) -> (i32, i32) {
    %c0_i32 = arith.constant 0 : i32
    %c0_i32_0 = arith.constant 0 : i32
    return %arg0, %c0_i32 : i32, i32
  }
}

module attributes {stable_mosaic.version = 11 : i64} {
  func.func @_transform_kernel(%arg0: i32, %arg1: memref<16x32xf32, #tpu.memory_space<vmem>>, %arg2: memref<32x32xf32, #tpu.memory_space<vmem>>, %arg3: memref<3x32xf32, #tpu.memory_space<vmem>>, %arg4: memref<16x32xf32, #tpu.memory_space<vmem>>) attributes {dimension_semantics = [#tpu.dimension_semantics<parallel>], iteration_bounds = array<i64: 1>, scalar_prefetch = 0 : i64, scratch_operands = 0 : i64, tpu.core_type = #tpu.core_type<tc>, window_params = [{transform_indices = @transform_0, window_bounds = array<i64: 16, 32>}, {pipeline_mode = #tpu.pipeline_mode<synchronous>, transform_indices = @transform_1, window_bounds = array<i64: 32, 32>}, {pipeline_mode = #tpu.pipeline_mode<synchronous>, transform_indices = @transform_2, window_bounds = array<i64: 3, 32>}, {transform_indices = @transform_3, window_bounds = array<i64: 16, 32>}]} {
    %c0 = arith.constant 0 : index
    %c0_0 = arith.constant 0 : index
    %0 = vector.load %arg1[%c0, %c0_0] : memref<16x32xf32, #tpu.memory_space<vmem>>, vector<16x32xf32>
    %c0_1 = arith.constant 0 : index
    %c0_2 = arith.constant 0 : index
    %1 = vector.load %arg2[%c0_1, %c0_2] : memref<32x32xf32, #tpu.memory_space<vmem>>, vector<32x32xf32>
    %cst = arith.constant dense<0.000000e+00> : vector<16x32xf32>
    %2 = tpu.matmul %0, %1, %cst {dimension_numbers = #tpu.dot_dimension_numbers<[1], [0], [0], [1], [0, 0, 1, 1], [], []>} : vector<16x32xf32>, vector<32x32xf32>, vector<16x32xf32> -> vector<16x32xf32>
    %c0_3 = arith.constant 0 : index
    %c0_4 = arith.constant 0 : index
    %3 = vector.load %arg3[%c0_3, %c0_4] : memref<3x32xf32, #tpu.memory_space<vmem>>, vector<3x32xf32>
    %4 = vector.extract_strided_slice %3 {offsets = [0, 0], sizes = [1, 32], strides = [1, 1]} : vector<3x32xf32> to vector<1x32xf32>
    %5 = vector.broadcast %4 : vector<1x32xf32> to vector<16x32xf32>
    %6 = arith.addf %2, %5 : vector<16x32xf32>
    %cst_5 = arith.constant 0.707106769 : f32
    %7 = vector.broadcast %cst_5 : f32 to vector<16x32xf32>
    %8 = arith.mulf %6, %7 : vector<16x32xf32>
    %9 = math.absf %8 : vector<16x32xf32>
    %cst_6 = arith.constant 0.327591091 : f32
    %10 = vector.broadcast %cst_6 : f32 to vector<16x32xf32>
    %11 = arith.mulf %10, %9 : vector<16x32xf32>
    %cst_7 = arith.constant 1.000000e+00 : f32
    %12 = vector.broadcast %cst_7 : f32 to vector<16x32xf32>
    %13 = arith.addf %12, %11 : vector<16x32xf32>
    %cst_8 = arith.constant 1.000000e+00 : f32
    %14 = vector.broadcast %cst_8 : f32 to vector<16x32xf32>
    %15 = arith.divf %14, %13 : vector<16x32xf32>
    %cst_9 = arith.constant 1.06140542 : f32
    %16 = vector.broadcast %cst_9 : f32 to vector<16x32xf32>
    %17 = arith.mulf %16, %15 : vector<16x32xf32>
    %cst_10 = arith.constant 1.45315206 : f32
    %18 = vector.broadcast %cst_10 : f32 to vector<16x32xf32>
    %19 = arith.subf %17, %18 : vector<16x32xf32>
    %20 = arith.mulf %19, %15 : vector<16x32xf32>
    %cst_11 = arith.constant 1.42141378 : f32
    %21 = vector.broadcast %cst_11 : f32 to vector<16x32xf32>
    %22 = arith.addf %20, %21 : vector<16x32xf32>
    %23 = arith.mulf %22, %15 : vector<16x32xf32>
    %cst_12 = arith.constant 0.284496725 : f32
    %24 = vector.broadcast %cst_12 : f32 to vector<16x32xf32>
    %25 = arith.subf %23, %24 : vector<16x32xf32>
    %26 = arith.mulf %25, %15 : vector<16x32xf32>
    %cst_13 = arith.constant 0.254829586 : f32
    %27 = vector.broadcast %cst_13 : f32 to vector<16x32xf32>
    %28 = arith.addf %26, %27 : vector<16x32xf32>
    %29 = arith.mulf %28, %15 : vector<16x32xf32>
    %cst_14 = arith.constant 0.000000e+00 : f32
    %30 = vector.broadcast %cst_14 : f32 to vector<16x32xf32>
    %31 = arith.subf %30, %9 : vector<16x32xf32>
    %32 = arith.mulf %31, %9 : vector<16x32xf32>
    %33 = math.exp %32 : vector<16x32xf32>
    %34 = arith.mulf %29, %33 : vector<16x32xf32>
    %cst_15 = arith.constant 1.000000e+00 : f32
    %35 = vector.broadcast %cst_15 : f32 to vector<16x32xf32>
    %36 = arith.subf %35, %34 : vector<16x32xf32>
    %cst_16 = arith.constant 0.000000e+00 : f32
    %37 = vector.broadcast %cst_16 : f32 to vector<16x32xf32>
    %38 = arith.cmpf oge, %8, %37 : vector<16x32xf32>
    %cst_17 = arith.constant 0.000000e+00 : f32
    %39 = vector.broadcast %cst_17 : f32 to vector<16x32xf32>
    %40 = arith.subf %39, %36 : vector<16x32xf32>
    %41 = arith.select %38, %36, %40 : vector<16x32xi1>, vector<16x32xf32>
    %cst_18 = arith.constant 1.000000e+00 : f32
    %42 = vector.broadcast %cst_18 : f32 to vector<16x32xf32>
    %43 = arith.addf %42, %41 : vector<16x32xf32>
    %cst_19 = arith.constant 5.000000e-01 : f32
    %44 = vector.broadcast %cst_19 : f32 to vector<16x32xf32>
    %45 = arith.mulf %44, %43 : vector<16x32xf32>
    %46 = arith.mulf %6, %45 : vector<16x32xf32>
    %cst_20 = arith.constant dense<0.000000e+00> : vector<16xf32>
    %47 = vector.multi_reduction <add>, %46, %cst_20 [1] : vector<16x32xf32> to vector<16xf32>
    %48 = vector.shape_cast %47 : vector<16xf32> to vector<16x1xf32>
    %49 = arith.mulf %46, %46 : vector<16x32xf32>
    %cst_21 = arith.constant dense<0.000000e+00> : vector<16xf32>
    %50 = vector.multi_reduction <add>, %49, %cst_21 [1] : vector<16x32xf32> to vector<16xf32>
    %51 = vector.shape_cast %50 : vector<16xf32> to vector<16x1xf32>
    %cst_22 = arith.constant 3.125000e-02 : f32
    %52 = vector.broadcast %cst_22 : f32 to vector<16x1xf32>
    %53 = arith.mulf %48, %52 : vector<16x1xf32>
    %cst_23 = arith.constant 3.125000e-02 : f32
    %54 = vector.broadcast %cst_23 : f32 to vector<16x1xf32>
    %55 = arith.mulf %51, %54 : vector<16x1xf32>
    %56 = arith.mulf %53, %53 : vector<16x1xf32>
    %57 = arith.subf %55, %56 : vector<16x1xf32>
    %cst_24 = arith.constant 0.000000e+00 : f32
    %58 = vector.broadcast %cst_24 : f32 to vector<16x1xf32>
    %59 = arith.maximumf %57, %58 : vector<16x1xf32>
    %cst_25 = arith.constant 9.99999996E-13 : f32
    %60 = vector.broadcast %cst_25 : f32 to vector<16x1xf32>
    %61 = arith.addf %59, %60 : vector<16x1xf32>
    %62 = math.rsqrt %61 : vector<16x1xf32>
    %63 = vector.extract_strided_slice %3 {offsets = [1, 0], sizes = [1, 32], strides = [1, 1]} : vector<3x32xf32> to vector<1x32xf32>
    %64 = vector.broadcast %53 : vector<16x1xf32> to vector<16x32xf32>
    %65 = arith.subf %46, %64 : vector<16x32xf32>
    %66 = vector.broadcast %62 : vector<16x1xf32> to vector<16x32xf32>
    %67 = arith.mulf %65, %66 : vector<16x32xf32>
    %68 = vector.broadcast %63 : vector<1x32xf32> to vector<16x32xf32>
    %69 = arith.mulf %68, %67 : vector<16x32xf32>
    %70 = vector.extract_strided_slice %3 {offsets = [2, 0], sizes = [1, 32], strides = [1, 1]} : vector<3x32xf32> to vector<1x32xf32>
    %71 = vector.broadcast %70 : vector<1x32xf32> to vector<16x32xf32>
    %72 = arith.addf %69, %71 : vector<16x32xf32>
    %c0_26 = arith.constant 0 : index
    %c0_27 = arith.constant 0 : index
    %73 = vector.load %arg4[%c0_26, %c0_27] : memref<16x32xf32, #tpu.memory_space<vmem>>, vector<16x32xf32>
    tpu.vector_store %arg4[%c0_26, %c0_27], %72 {strides = array<i32>} : memref<16x32xf32, #tpu.memory_space<vmem>>, vector<16x32xf32>,
    return
  }
  func.func @transform_0(%arg0: i32) -> (i32, i32) {
    %c0_i32 = arith.constant 0 : i32
    %c0_i32_0 = arith.constant 0 : i32
    return %arg0, %c0_i32 : i32, i32
  }
  func.func @transform_1(%arg0: i32) -> (i32, i32) {
    %c0_i32 = arith.constant 0 : i32
    %c0_i32_0 = arith.constant 0 : i32
    %c0_i32_1 = arith.constant 0 : i32
    return %c0_i32, %c0_i32_0 : i32, i32
  }
  func.func @transform_2(%arg0: i32) -> (i32, i32) {
    %c0_i32 = arith.constant 0 : i32
    %c0_i32_0 = arith.constant 0 : i32
    %c0_i32_1 = arith.constant 0 : i32
    return %c0_i32, %c0_i32_0 : i32, i32
  }
  func.func @transform_3(%arg0: i32) -> (i32, i32) {
    %c0_i32 = arith.constant 0 : i32
    %c0_i32_0 = arith.constant 0 : i32
    return %arg0, %c0_i32 : i32, i32
  }
}

</mosaic_0001>

<bundles_post_ra>
// kernel: tpu_custom_call.1
= control target key start
LH: loop header
LB: loop body
LE: loop exit
PB: predicated region body
PF: predicated region fallthrough
CT: control target
= control target key end

     0   :  { %8 = vsyncpa [#allocation3], 0  ;;  %s465_s0 = inlined_call_operand.hbm [shape: f32[16,32], index: 0, kind: input, shape index: {}]   ;;  %s466_s1 = inlined_call_operand.hbm [shape: f32[32,32], index: 1, kind: input, shape index: {}]   ;;  %s467_s2 = inlined_call_operand.vmem [shape: f32[3,32], index: 2, kind: input, shape index: {}]   ;;  %s468_s3 = inlined_call_operand.hbm [shape: f32[16,32], index: 3, kind: output, shape index: {}]  }
   0x1   :  { %9 = vsyncpa [#allocation6], 0 }
   0x2   :  { %10 = vsyncpa [#allocation4], 0  ;;  %s374_s12 = smov [#allocation2]   ;;  %s302_s16 = scalar_lea.hbm %s465_s0, 256 }
   0x3   :  { %s16_s13 = sshll.u32 %s374_s12, 4  ;;  %p303_p0 = scmp.ne.s32.totalorder %s465_s0, %s302_s16  ;;  %s17_s13 = int_to_ptr.vmem [resolvable:$true] %s16_s13 }
   0x4   :  { %p306_p1 = scmp.lt.u32.totalorder %s302_s16, %s465_s0 }
   0x6   :  { %p308_p2 = pnand %p306_p1, %p303_p0 }
   0x8   :  { %311 = shalt.err (!%p308_p2)
}
   0x9   :  { %s312_s21 = scalar_lea.vmem %s17_s13, 256  ;;  %p317_p4 = scmp.lt.s32.totalorder %s17_s13, %s17_s13 }
   0xa   :  { %p313_p3 = scmp.ne.s32.totalorder %s17_s13, %s312_s21  ;;  %p318_p5 = scmp.lt.s32.totalorder %s312_s21, %s312_s21 }
   0xc   :  { %p319_p6 = por %p318_p5, %p317_p4 }
   0xe   :  { %p320_p7 = pnand %p319_p6, %p313_p3 }
  0x10   :  { %323 = shalt.err (!%p320_p7)
}
  0x11   :  { %s375_s22 = smov 128   ;;  %s376_s23 = smov 8  }
  0x12   :  { %22 = dma.hbm_to_vmem [thread:$0]  %s465_s0, 256, %s17_s13, [#allocation3], %s375_s22, %s375_s22, %s376_s23  }
  0x13   :  { %s377_s26 = smov [#allocation5]   ;;  %s324_s30 = scalar_lea.hbm %s466_s1, 512 }
  0x14   :  { %s28_s27 = sshll.u32 %s377_s26, 4  ;;  %p325_p8 = scmp.ne.s32.totalorder %s466_s1, %s324_s30  ;;  %s29_s27 = int_to_ptr.vmem [resolvable:$true] %s28_s27 }
  0x15   :  { %p328_p9 = scmp.lt.u32.totalorder %s324_s30, %s466_s1 }
  0x17   :  { %p330_p10 = pnand %p328_p9, %p325_p8 }
  0x19   :  { %333 = shalt.err (!%p330_p10)
}
  0x1a   :  { %s334_s8 = scalar_lea.vmem %s29_s27, 512  ;;  %p339_p12 = scmp.lt.s32.totalorder %s29_s27, %s29_s27 }
  0x1b   :  { %p335_p11 = scmp.ne.s32.totalorder %s29_s27, %s334_s8  ;;  %p340_p13 = scmp.lt.s32.totalorder %s334_s8, %s334_s8 }
  0x1d   :  { %p341_p0 = por %p340_p13, %p339_p12 }
  0x1f   :  { %p342_p1 = pnand %p341_p0, %p335_p11 }
  0x21   :  { %345 = shalt.err (!%p342_p1)
}
  0x22   :  { %34 = dma.hbm_to_vmem [thread:$0]  %s466_s1, 512, %s29_s27, [#allocation6], %s375_s22, %s375_s22, %s376_s23  }
  0x23   :  { %368 = dma.done.wait [#allocation3], 256  }
  0x24   :  { %369 = vsyncadd [#allocation3], 4294967040 }
  0x25   :  { %370 = dma.done.wait [#allocation6], 512  }
  0x26   :  { %371 = vsyncadd [#allocation6], 4294966784  ;;  %vm54_vm0 = vcmask 261120   ;;  %v45_v0 = vld [vmem:[#allocation5] sm:$0xff]  ;;  %v46_v1 = vld [vmem:[#allocation5 + $0x8] sm:$0xff]  ;;  %v50_v8 = vlaneseq }
  0x27   :  { %v47_v2 = vld [vmem:[#allocation5 + $0x10] sm:$0xff]  ;;  %v277_v3 = vpack.c.bf16 %v46_v1, %v45_v0  ;;  %v48_v4 = vld [vmem:[#allocation5 + $0x18] sm:$0xff] }
  0x28   :  { %v43_v5 = vld [vmem:[#allocation2] sm:$0xff]  ;;  %v281_v6 = vpack.c.bf16 %v48_v4, %v47_v2  ;;  %v44_v7 = vld [vmem:[#allocation2 + $0x8] sm:$0xff]  ;;  %v431_v9 = vshrl.u32 %v50_v8, 7 }
  0x29   :  { %274 = vmatprep.mubr.msk.f32.mxu0 %vm54_vm0, %v43_v5  ;;  %278 = vmatprep.subr.bf16.mxu0 %v277_v3  ;;  %v437_v11 = vld [vmem:[%s467_s2] sm:$0x7]  ;;  %s378_s2 = smov [#allocation7]  }
  0x2a   :  { %280 = vmatpush3.bf16.msra.mxu0 %v277_v3  ;;  %v52_v10 = vsub.s32 0, %v431_v9  ;;  %s241_s11 = sshll.u32 %s378_s2, 4  ;;  %s242_s11 = int_to_ptr.vmem [resolvable:$true] %s241_s11 }
  0x2b   :  { %282 = vmatprep.subr.bf16.mxu0 %v281_v6  ;;  %s346_s12 = scalar_lea.vmem %s242_s11, 256  ;;  %p351_p3 = scmp.lt.s32.totalorder %s242_s11, %s242_s11 }
  0x2c   :  { %v53_v12 = vrot.slane %v437_v11, %v52_v10  ;;  %p347_p2 = scmp.ne.s32.totalorder %s242_s11, %s346_s12  ;;  %p352_p4 = scmp.lt.s32.totalorder %s346_s12, %s346_s12 }
  0x2e   :  { %284 = vmatpush3.bf16.msra.mxu0 %v281_v6  ;;  %p353_p5 = por %p352_p4, %p351_p3 }
  0x30   :  { %p354_p6 = pnand %p353_p5, %p347_p2 }
  0x31   :  { %275 = vmatmul.mubr.msk.f32.vlgmr.msra.gmra.mrb[0].mxu0 %vm54_vm0, %v44_v7 }
 0x104   :  { %v276_v13 = vpop.f32.mrb[0].mxu0 }
 0x105   :  { %v133_v14 = vadd.f32 %v276_v13, %v53_v12  ;;  %v127_v15 = vpop.f32.mrb[1].mxu0 }
 0x106   :  { %v128_v16 = vadd.f32 %v127_v15, %v53_v12 }
 0x107   :  { %v137_v17 = vmul.f32 0.70710677, %v133_v14 }
 0x108   :  { %v136_v18 = vmul.f32 0.70710677, %v128_v16 }
 0x109   :  { %v139_v19 = vand.u32 2147483647, %v137_v17  ;;  %vm179_vm1 = vcmp.ge.f32.partialorder %v137_v17, 0.0 }
 0x10a   :  { %v138_v20 = vand.u32 2147483647, %v136_v18  ;;  %vm178_vm2 = vcmp.ge.f32.partialorder %v136_v18, 0.0 }
 0x10b   :  { %v141_v21 = vmul.f32 0.3275911, %v139_v19  ;;  %v167_v25 = vsub.f32 0.0, %v139_v19 }
 0x10c   :  { %v140_v22 = vmul.f32 0.3275911, %v138_v20  ;;  %v166_v26 = vsub.f32 0.0, %v138_v20 }
 0x10d   :  { %v143_v23 = vadd.f32 1.0, %v141_v21  ;;  %v169_v28 = vmul.f32 %v167_v25, %v139_v19 }
 0x10e   :  { %v142_v24 = vadd.f32 1.0, %v140_v22  ;;  %v168_v31 = vmul.f32 %v166_v26, %v138_v20 }
 0x10f   :  { %290 = vrcp.f32 %v143_v23  ;;  %v172_v34 = vmul.f32 1.442695, %v169_v28  ;;  %v230_v28 = vsub.s32 2, %v431_v9 }
 0x110   :  { %292 = vrcp.f32 %v142_v24  ;;  %v170_v37 = vmul.f32 1.442695, %v168_v31 }
 0x111   :  { %294 = vpow2.f32 %v172_v34 }
 0x112   :  { %296 = vpow2.f32 %v170_v37 }
 0x119   :  { %v291_v27 = vpop.eup %290 }
 0x11a   :  { %v293_v29 = vpop.eup %292  ;;  %v149_v30 = vmul.f32 1.0614054, %v291_v27 }
 0x11b   :  { %v148_v32 = vmul.f32 1.0614054, %v293_v29  ;;  %v295_v50 = vpop.eup %294 }
 0x11c   :  { %v257_v33 = vadd.f32 -1.4531521, %v149_v30  ;;  %v297_v52 = vpop.eup %296 }
 0x11d   :  { %v256_v35 = vadd.f32 -1.4531521, %v148_v32  ;;  %v231_v32 = vrot.slane %v437_v11, %v230_v28 }
 0x11e   :  { %v153_v36 = vmul.f32 %v291_v27, %v257_v33 }
 0x11f   :  { %v152_v38 = vmul.f32 %v293_v29, %v256_v35 }
 0x120   :  { %v155_v39 = vadd.f32 1.4214138, %v153_v36 }
 0x121   :  { %v154_v40 = vadd.f32 1.4214138, %v152_v38 }
 0x122   :  { %v157_v41 = vmul.f32 %v291_v27, %v155_v39 }
 0x123   :  { %v156_v42 = vmul.f32 %v293_v29, %v154_v40 }
 0x124   :  { %v259_v43 = vadd.f32 -0.28449672, %v157_v41 }
 0x125   :  { %v258_v44 = vadd.f32 -0.28449672, %v156_v42 }
 0x126   :  { %v161_v45 = vmul.f32 %v291_v27, %v259_v43 }
 0x127   :  { %v160_v46 = vmul.f32 %v293_v29, %v258_v44 }
 0x128   :  { %v163_v47 = vadd.f32 0.2548296, %v161_v45 }
 0x129   :  { %v162_v48 = vadd.f32 0.2548296, %v160_v46 }
 0x12a   :  { %v165_v49 = vmul.f32 %v291_v27, %v163_v47  ;;  %v224_v27 = vsub.s32 1, %v431_v9 }
 0x12b   :  { %v164_v51 = vmul.f32 %v293_v29, %v162_v48 }
 0x12c   :  { %v175_v53 = vmul.f32 %v295_v50, %v165_v49  ;;  %v225_v29 = vrot.slane %v437_v11, %v224_v27 }
 0x12d   :  { %v174_v54 = vmul.f32 %v297_v52, %v164_v51 }
 0x12e   :  { %v177_v55 = vsub.f32 1.0, %v175_v53 }
 0x12f   :  { %v176_v56 = vsub.f32 1.0, %v174_v54 }
 0x130   :  { %v181_v57 = vsub.f32 0.0, %v177_v55 }
 0x131   :  { %v180_v58 = vsub.f32 0.0, %v176_v56 }
 0x132   :  { %v183_v59 = vsel %vm179_vm1, %v177_v55, %v181_v57 }
 0x133   :  { %v185_v60 = vadd.f32 1.0, %v183_v59  ;;  %v182_v61 = vsel %vm178_vm2, %v176_v56, %v180_v58 }
 0x134   :  { %v184_v62 = vadd.f32 1.0, %v182_v61 }
 0x135   :  { %v187_v63 = vmul.f32 0.5, %v185_v60 }
 0x136   :  { %v186_v0 = vmul.f32 0.5, %v184_v62 }
 0x137   :  { %v189_v1 = vmul.f32 %v187_v63, %v133_v14 }
 0x138   :  { %v188_v2 = vmul.f32 %v186_v0, %v128_v16 }
 0x139   :  { %v197_v6 = vmul.f32 %v189_v1, %v189_v1  ;;  %v193_v7 = vsel %vm54_vm0, %v189_v1, 0.0 }
 0x13a   :  { %v190_v3 = vsel %vm54_vm0, %v188_v2, 0.0  ;;  %v196_v4 = vmul.f32 %v188_v2, %v188_v2 }
 0x13b   :  { %191 = vadd.xlane.f32.xlu0 %v190_v3  ;;  %v201_v8 = vsel %vm54_vm0, %v197_v6, 0.0 }
 0x13c   :  { %v198_v5 = vsel %vm54_vm0, %v196_v4, 0.0 }
 0x13d   :  { %199 = vadd.xlane.f32.xlu1 %v198_v5 }
 0x13f   :  { %194 = vadd.xlane.f32.xlu0 %v193_v7 }
 0x141   :  { %202 = vadd.xlane.f32.xlu1 %v201_v8 }
 0x1c8   :  { %v192_v10 = vpop.xlane.xlu0 %191 }
 0x1c9   :  { %v204_v12 = vmul.f32 0.03125, %v192_v10 }
 0x1ca   :  { %v200_v13 = vpop.xlane.xlu1 %199 }
 0x1cb   :  { %v208_v15 = vmul.f32 %v204_v12, %v204_v12  ;;  %v206_v14 = vmul.f32 0.03125, %v200_v13  ;;  %v218_v30 = vsub.f32 %v188_v2, %v204_v12 }
 0x1cc   :  { %v195_v16 = vpop.xlane.xlu0 %194 }
 0x1cd   :  { %v210_v17 = vsub.f32 %v206_v14, %v208_v15  ;;  %v205_v18 = vmul.f32 0.03125, %v195_v16 }
 0x1ce   :  { %v203_v19 = vpop.xlane.xlu1 %202 }
 0x1cf   :  { %v212_v20 = vmax.f32 %v210_v17, 0.0  ;;  %v209_v21 = vmul.f32 %v205_v18, %v205_v18  ;;  %v207_v22 = vmul.f32 0.03125, %v203_v19  ;;  %v219_v34 = vsub.f32 %v189_v1, %v205_v18 }
 0x1d1   :  { %v214_v23 = vadd.f32 1e-12, %v212_v20  ;;  %v211_v24 = vsub.f32 %v207_v22, %v209_v21 }
 0x1d3   :  { %298 = vrsqrt.f32 %v214_v23  ;;  %v213_v25 = vmax.f32 %v211_v24, 0.0 }
 0x1d5   :  { %v215_v26 = vadd.f32 1e-12, %v213_v25 }
 0x1d7   :  { %300 = vrsqrt.f32 %v215_v26 }
 0x1dd   :  { %v299_v31 = vpop.eup %298 }
 0x1de   :  { %v220_v33 = vmul.f32 %v299_v31, %v218_v30 }
 0x1e0   :  { %v226_v35 = vmul.f32 %v225_v29, %v220_v33 }
 0x1e1   :  { %v301_v36 = vpop.eup %300 }
 0x1e2   :  { %v221_v37 = vmul.f32 %v301_v36, %v219_v34  ;;  %v232_v38 = vadd.f32 %v231_v32, %v226_v35 }
 0x1e4   :  { %v227_v39 = vmul.f32 %v225_v29, %v221_v37  ;;  %234 = vst.msk [vmem:[#allocation7] sm:$0xff] %vm54_vm0, %v232_v38 }
 0x1e6   :  { %v233_v40 = vadd.f32 %v231_v32, %v227_v39 }
 0x1e8   :  { %235 = vst.msk [vmem:[#allocation7 + $0x8] sm:$0xff] %vm54_vm0, %v233_v40 }
 0x1e9   :  { %357 = shalt.err (!%p354_p6)
}
 0x1ea   :  { %s358_s15 = scalar_lea.hbm %s468_s3, 256 }
 0x1eb   :  { %p359_p7 = scmp.ne.s32.totalorder %s468_s3, %s358_s15  ;;  %p362_p8 = scmp.lt.u32.totalorder %s358_s15, %s468_s3 }
 0x1ed   :  { %p364_p9 = pnand %p362_p8, %p359_p7 }
 0x1ef   :  { %367 = shalt.err (!%p364_p9)
}
 0x1f0   :  { %247 = dma.vmem_to_hbm [thread:$0]  %s242_s11, 256, %s468_s3, [#allocation4], %s375_s22, %s375_s22, %s376_s23  }
 0x1f1   :  { %372 = dma.done.wait [#allocation4], 256  }
 0x1f2   :  { %373 = vsyncadd [#allocation4], 4294967040 }
 0x1f3   :  { %251 = vsyncpa [#allocation3], 1 }
 0x1f4   :  { %252 = vsyncpa [#allocation6], 1 }
 0x1f5   :  { %253 = vsyncpa [#allocation4], 1 }

// kernel: tpu_custom_call.1
= control target key start
LH: loop header
LB: loop body
LE: loop exit
PB: predicated region body
PF: predicated region fallthrough
CT: control target
= control target key end

     0   :  { %8 = vsyncpa [#allocation3], 0  ;;  %s465_s0 = inlined_call_operand.hbm [shape: f32[16,32], index: 0, kind: input, shape index: {}]   ;;  %s466_s1 = inlined_call_operand.hbm [shape: f32[32,32], index: 1, kind: input, shape index: {}]   ;;  %s467_s2 = inlined_call_operand.vmem [shape: f32[3,32], index: 2, kind: input, shape index: {}]   ;;  %s468_s3 = inlined_call_operand.hbm [shape: f32[16,32], index: 3, kind: output, shape index: {}]  }
   0x1   :  { %9 = vsyncpa [#allocation6], 0 }
   0x2   :  { %10 = vsyncpa [#allocation4], 0  ;;  %s374_s12 = smov [#allocation2]   ;;  %s302_s16 = scalar_lea.hbm %s465_s0, 256 }
   0x3   :  { %s16_s13 = sshll.u32 %s374_s12, 4  ;;  %p303_p0 = scmp.ne.s32.totalorder %s465_s0, %s302_s16  ;;  %s17_s13 = int_to_ptr.vmem [resolvable:$true] %s16_s13 }
   0x4   :  { %p306_p1 = scmp.lt.u32.totalorder %s302_s16, %s465_s0 }
   0x6   :  { %p308_p2 = pnand %p306_p1, %p303_p0 }
   0x8   :  { %311 = shalt.err (!%p308_p2)
}
   0x9   :  { %s312_s21 = scalar_lea.vmem %s17_s13, 256  ;;  %p317_p4 = scmp.lt.s32.totalorder %s17_s13, %s17_s13 }
   0xa   :  { %p313_p3 = scmp.ne.s32.totalorder %s17_s13, %s312_s21  ;;  %p318_p5 = scmp.lt.s32.totalorder %s312_s21, %s312_s21 }
   0xc   :  { %p319_p6 = por %p318_p5, %p317_p4 }
   0xe   :  { %p320_p7 = pnand %p319_p6, %p313_p3 }
  0x10   :  { %323 = shalt.err (!%p320_p7)
}
  0x11   :  { %s375_s22 = smov 128   ;;  %s376_s23 = smov 8  }
  0x12   :  { %22 = dma.hbm_to_vmem [thread:$0]  %s465_s0, 256, %s17_s13, [#allocation3], %s375_s22, %s375_s22, %s376_s23  }
  0x13   :  { %s377_s26 = smov [#allocation5]   ;;  %s324_s30 = scalar_lea.hbm %s466_s1, 512 }
  0x14   :  { %s28_s27 = sshll.u32 %s377_s26, 4  ;;  %p325_p8 = scmp.ne.s32.totalorder %s466_s1, %s324_s30  ;;  %s29_s27 = int_to_ptr.vmem [resolvable:$true] %s28_s27 }
  0x15   :  { %p328_p9 = scmp.lt.u32.totalorder %s324_s30, %s466_s1 }
  0x17   :  { %p330_p10 = pnand %p328_p9, %p325_p8 }
  0x19   :  { %333 = shalt.err (!%p330_p10)
}
  0x1a   :  { %s334_s8 = scalar_lea.vmem %s29_s27, 512  ;;  %p339_p12 = scmp.lt.s32.totalorder %s29_s27, %s29_s27 }
  0x1b   :  { %p335_p11 = scmp.ne.s32.totalorder %s29_s27, %s334_s8  ;;  %p340_p13 = scmp.lt.s32.totalorder %s334_s8, %s334_s8 }
  0x1d   :  { %p341_p0 = por %p340_p13, %p339_p12 }
  0x1f   :  { %p342_p1 = pnand %p341_p0, %p335_p11 }
  0x21   :  { %345 = shalt.err (!%p342_p1)
}
  0x22   :  { %34 = dma.hbm_to_vmem [thread:$0]  %s466_s1, 512, %s29_s27, [#allocation6], %s375_s22, %s375_s22, %s376_s23  }
  0x23   :  { %368 = dma.done.wait [#allocation3], 256  }
  0x24   :  { %369 = vsyncadd [#allocation3], 4294967040 }
  0x25   :  { %370 = dma.done.wait [#allocation6], 512  }
  0x26   :  { %371 = vsyncadd [#allocation6], 4294966784  ;;  %vm54_vm0 = vcmask 261120   ;;  %v45_v0 = vld [vmem:[#allocation5] sm:$0xff]  ;;  %v46_v1 = vld [vmem:[#allocation5 + $0x8] sm:$0xff]  ;;  %v50_v8 = vlaneseq }
  0x27   :  { %v47_v2 = vld [vmem:[#allocation5 + $0x10] sm:$0xff]  ;;  %v277_v3 = vpack.c.bf16 %v46_v1, %v45_v0  ;;  %v48_v4 = vld [vmem:[#allocation5 + $0x18] sm:$0xff] }
  0x28   :  { %v43_v5 = vld [vmem:[#allocation2] sm:$0xff]  ;;  %v281_v6 = vpack.c.bf16 %v48_v4, %v47_v2  ;;  %v44_v7 = vld [vmem:[#allocation2 + $0x8] sm:$0xff]  ;;  %v431_v9 = vshrl.u32 %v50_v8, 7 }
  0x29   :  { %274 = vmatprep.mubr.msk.f32.mxu0 %vm54_vm0, %v43_v5  ;;  %278 = vmatprep.subr.bf16.mxu0 %v277_v3  ;;  %v437_v11 = vld [vmem:[%s467_s2] sm:$0x7]  ;;  %s378_s2 = smov [#allocation7]  }
  0x2a   :  { %280 = vmatpush3.bf16.msra.mxu0 %v277_v3  ;;  %v52_v10 = vsub.s32 0, %v431_v9  ;;  %s241_s11 = sshll.u32 %s378_s2, 4  ;;  %s242_s11 = int_to_ptr.vmem [resolvable:$true] %s241_s11 }
  0x2b   :  { %282 = vmatprep.subr.bf16.mxu0 %v281_v6  ;;  %s346_s12 = scalar_lea.vmem %s242_s11, 256  ;;  %p351_p3 = scmp.lt.s32.totalorder %s242_s11, %s242_s11 }
  0x2c   :  { %v53_v12 = vrot.slane %v437_v11, %v52_v10  ;;  %p347_p2 = scmp.ne.s32.totalorder %s242_s11, %s346_s12  ;;  %p352_p4 = scmp.lt.s32.totalorder %s346_s12, %s346_s12 }
  0x2e   :  { %284 = vmatpush3.bf16.msra.mxu0 %v281_v6  ;;  %p353_p5 = por %p352_p4, %p351_p3 }
  0x30   :  { %p354_p6 = pnand %p353_p5, %p347_p2 }
  0x31   :  { %275 = vmatmul.mubr.msk.f32.vlgmr.msra.gmra.mrb[0].mxu0 %vm54_vm0, %v44_v7 }
 0x104   :  { %v276_v13 = vpop.f32.mrb[0].mxu0 }
 0x105   :  { %v133_v14 = vadd.f32 %v276_v13, %v53_v12  ;;  %v127_v15 = vpop.f32.mrb[1].mxu0 }
 0x106   :  { %v128_v16 = vadd.f32 %v127_v15, %v53_v12 }
 0x107   :  { %v137_v17 = vmul.f32 0.70710677, %v133_v14 }
 0x108   :  { %v136_v18 = vmul.f32 0.70710677, %v128_v16 }
 0x109   :  { %v139_v19 = vand.u32 2147483647, %v137_v17  ;;  %vm179_vm1 = vcmp.ge.f32.partialorder %v137_v17, 0.0 }
 0x10a   :  { %v138_v20 = vand.u32 2147483647, %v136_v18  ;;  %vm178_vm2 = vcmp.ge.f32.partialorder %v136_v18, 0.0 }
 0x10b   :  { %v141_v21 = vmul.f32 0.3275911, %v139_v19  ;;  %v167_v25 = vsub.f32 0.0, %v139_v19 }
 0x10c   :  { %v140_v22 = vmul.f32 0.3275911, %v138_v20  ;;  %v166_v26 = vsub.f32 0.0, %v138_v20 }
 0x10d   :  { %v143_v23 = vadd.f32 1.0, %v141_v21  ;;  %v169_v28 = vmul.f32 %v167_v25, %v139_v19 }
 0x10e   :  { %v142_v24 = vadd.f32 1.0, %v140_v22  ;;  %v168_v31 = vmul.f32 %v166_v26, %v138_v20 }
 0x10f   :  { %290 = vrcp.f32 %v143_v23  ;;  %v172_v34 = vmul.f32 1.442695, %v169_v28  ;;  %v230_v28 = vsub.s32 2, %v431_v9 }
 0x110   :  { %292 = vrcp.f32 %v142_v24  ;;  %v170_v37 = vmul.f32 1.442695, %v168_v31 }
 0x111   :  { %294 = vpow2.f32 %v172_v34 }
 0x112   :  { %296 = vpow2.f32 %v170_v37 }
 0x119   :  { %v291_v27 = vpop.eup %290 }
 0x11a   :  { %v293_v29 = vpop.eup %292  ;;  %v149_v30 = vmul.f32 1.0614054, %v291_v27 }
 0x11b   :  { %v148_v32 = vmul.f32 1.0614054, %v293_v29  ;;  %v295_v50 = vpop.eup %294 }
 0x11c   :  { %v257_v33 = vadd.f32 -1.4531521, %v149_v30  ;;  %v297_v52 = vpop.eup %296 }
 0x11d   :  { %v256_v35 = vadd.f32 -1.4531521, %v148_v32  ;;  %v231_v32 = vrot.slane %v437_v11, %v230_v28 }
 0x11e   :  { %v153_v36 = vmul.f32 %v291_v27, %v257_v33 }
 0x11f   :  { %v152_v38 = vmul.f32 %v293_v29, %v256_v35 }
 0x120   :  { %v155_v39 = vadd.f32 1.4214138, %v153_v36 }
 0x121   :  { %v154_v40 = vadd.f32 1.4214138, %v152_v38 }
 0x122   :  { %v157_v41 = vmul.f32 %v291_v27, %v155_v39 }
 0x123   :  { %v156_v42 = vmul.f32 %v293_v29, %v154_v40 }
 0x124   :  { %v259_v43 = vadd.f32 -0.28449672, %v157_v41 }
 0x125   :  { %v258_v44 = vadd.f32 -0.28449672, %v156_v42 }
 0x126   :  { %v161_v45 = vmul.f32 %v291_v27, %v259_v43 }
 0x127   :  { %v160_v46 = vmul.f32 %v293_v29, %v258_v44 }
 0x128   :  { %v163_v47 = vadd.f32 0.2548296, %v161_v45 }
 0x129   :  { %v162_v48 = vadd.f32 0.2548296, %v160_v46 }
 0x12a   :  { %v165_v49 = vmul.f32 %v291_v27, %v163_v47  ;;  %v224_v27 = vsub.s32 1, %v431_v9 }
 0x12b   :  { %v164_v51 = vmul.f32 %v293_v29, %v162_v48 }
 0x12c   :  { %v175_v53 = vmul.f32 %v295_v50, %v165_v49  ;;  %v225_v29 = vrot.slane %v437_v11, %v224_v27 }
 0x12d   :  { %v174_v54 = vmul.f32 %v297_v52, %v164_v51 }
 0x12e   :  { %v177_v55 = vsub.f32 1.0, %v175_v53 }
 0x12f   :  { %v176_v56 = vsub.f32 1.0, %v174_v54 }
 0x130   :  { %v181_v57 = vsub.f32 0.0, %v177_v55 }
 0x131   :  { %v180_v58 = vsub.f32 0.0, %v176_v56 }
 0x132   :  { %v183_v59 = vsel %vm179_vm1, %v177_v55, %v181_v57 }
 0x133   :  { %v185_v60 = vadd.f32 1.0, %v183_v59  ;;  %v182_v61 = vsel %vm178_vm2, %v176_v56, %v180_v58 }
 0x134   :  { %v184_v62 = vadd.f32 1.0, %v182_v61 }
 0x135   :  { %v187_v63 = vmul.f32 0.5, %v185_v60 }
 0x136   :  { %v186_v0 = vmul.f32 0.5, %v184_v62 }
 0x137   :  { %v189_v1 = vmul.f32 %v187_v63, %v133_v14 }
 0x138   :  { %v188_v2 = vmul.f32 %v186_v0, %v128_v16 }
 0x139   :  { %v197_v6 = vmul.f32 %v189_v1, %v189_v1  ;;  %v193_v7 = vsel %vm54_vm0, %v189_v1, 0.0 }
 0x13a   :  { %v190_v3 = vsel %vm54_vm0, %v188_v2, 0.0  ;;  %v196_v4 = vmul.f32 %v188_v2, %v188_v2 }
 0x13b   :  { %191 = vadd.xlane.f32.xlu0 %v190_v3  ;;  %v201_v8 = vsel %vm54_vm0, %v197_v6, 0.0 }
 0x13c   :  { %v198_v5 = vsel %vm54_vm0, %v196_v4, 0.0 }
 0x13d   :  { %199 = vadd.xlane.f32.xlu1 %v198_v5 }
 0x13f   :  { %194 = vadd.xlane.f32.xlu0 %v193_v7 }
 0x141   :  { %202 = vadd.xlane.f32.xlu1 %v201_v8 }
 0x1c8   :  { %v192_v10 = vpop.xlane.xlu0 %191 }
 0x1c9   :  { %v204_v12 = vmul.f32 0.03125, %v192_v10 }
 0x1ca   :  { %v200_v13 = vpop.xlane.xlu1 %199 }
 0x1cb   :  { %v208_v15 = vmul.f32 %v204_v12, %v204_v12  ;;  %v206_v14 = vmul.f32 0.03125, %v200_v13  ;;  %v218_v30 = vsub.f32 %v188_v2, %v204_v12 }
 0x1cc   :  { %v195_v16 = vpop.xlane.xlu0 %194 }
 0x1cd   :  { %v210_v17 = vsub.f32 %v206_v14, %v208_v15  ;;  %v205_v18 = vmul.f32 0.03125, %v195_v16 }
 0x1ce   :  { %v203_v19 = vpop.xlane.xlu1 %202 }
 0x1cf   :  { %v212_v20 = vmax.f32 %v210_v17, 0.0  ;;  %v209_v21 = vmul.f32 %v205_v18, %v205_v18  ;;  %v207_v22 = vmul.f32 0.03125, %v203_v19  ;;  %v219_v34 = vsub.f32 %v189_v1, %v205_v18 }
 0x1d1   :  { %v214_v23 = vadd.f32 1e-12, %v212_v20  ;;  %v211_v24 = vsub.f32 %v207_v22, %v209_v21 }
 0x1d3   :  { %298 = vrsqrt.f32 %v214_v23  ;;  %v213_v25 = vmax.f32 %v211_v24, 0.0 }
 0x1d5   :  { %v215_v26 = vadd.f32 1e-12, %v213_v25 }
 0x1d7   :  { %300 = vrsqrt.f32 %v215_v26 }
 0x1dd   :  { %v299_v31 = vpop.eup %298 }
 0x1de   :  { %v220_v33 = vmul.f32 %v299_v31, %v218_v30 }
 0x1e0   :  { %v226_v35 = vmul.f32 %v225_v29, %v220_v33 }
 0x1e1   :  { %v301_v36 = vpop.eup %300 }
 0x1e2   :  { %v221_v37 = vmul.f32 %v301_v36, %v219_v34  ;;  %v232_v38 = vadd.f32 %v231_v32, %v226_v35 }
 0x1e4   :  { %v227_v39 = vmul.f32 %v225_v29, %v221_v37  ;;  %234 = vst.msk [vmem:[#allocation7] sm:$0xff] %vm54_vm0, %v232_v38 }
 0x1e6   :  { %v233_v40 = vadd.f32 %v231_v32, %v227_v39 }
 0x1e8   :  { %235 = vst.msk [vmem:[#allocation7 + $0x8] sm:$0xff] %vm54_vm0, %v233_v40 }
 0x1e9   :  { %357 = shalt.err (!%p354_p6)
}
 0x1ea   :  { %s358_s15 = scalar_lea.hbm %s468_s3, 256 }
 0x1eb   :  { %p359_p7 = scmp.ne.s32.totalorder %s468_s3, %s358_s15  ;;  %p362_p8 = scmp.lt.u32.totalorder %s358_s15, %s468_s3 }
 0x1ed   :  { %p364_p9 = pnand %p362_p8, %p359_p7 }
 0x1ef   :  { %367 = shalt.err (!%p364_p9)
}
 0x1f0   :  { %247 = dma.vmem_to_hbm [thread:$0]  %s242_s11, 256, %s468_s3, [#allocation4], %s375_s22, %s375_s22, %s376_s23  }
 0x1f1   :  { %372 = dma.done.wait [#allocation4], 256  }
 0x1f2   :  { %373 = vsyncadd [#allocation4], 4294967040 }
 0x1f3   :  { %251 = vsyncpa [#allocation3], 1 }
 0x1f4   :  { %252 = vsyncpa [#allocation6], 1 }
 0x1f5   :  { %253 = vsyncpa [#allocation4], 1 }

</bundles_post_ra>
